<compile_context>
chip_gen: v5e
topology: v5e:2x2
jax: 0.10.0
libtpu: 0.0.40
codegen_flags: <defaults>
</compile_context>

<pallas_src>
import jax
import jax.numpy as jnp
from jax.experimental import pallas as pl
from jax.experimental.pallas import tpu as pltpu


def _round_up(x, m):
    return ((x + m - 1) // m) * m


def _multipred_kernel(x1_ref, x2_ref, w1_ref, b1_ref, w2_ref, b2_ref,
                      wo1_ref, wo2_ref, bo_ref, out_ref):
    """relu(x1@w1+b1) @ wo1 + relu(x2@w2+b2) @ wo2 + bo, in one grid step."""
    cdt = w1_ref.dtype                      # MXU operand dtype (bf16 or f32)

    # Sub-model 1: MXU dot with f32 accumulation, f32 bias + ReLU on the VPU.
    h1 = jnp.dot(x1_ref[...].astype(cdt), w1_ref[...],
                 preferred_element_type=jnp.float32)
    h1 = jnp.maximum(h1 + b1_ref[...], 0.0)                    # [tb, Hp] f32

    # Sub-model 2.
    h2 = jnp.dot(x2_ref[...].astype(cdt), w2_ref[...],
                 preferred_element_type=jnp.float32)
    h2 = jnp.maximum(h2 + b2_ref[...], 0.0)                    # [tb, Hp] f32

    # Output head on cat(h1, h2): two accumulated dots == one dot against the
    # row-concatenated [2H, O] weight, without materializing the concat.
    logits = (jnp.dot(h1.astype(cdt), wo1_ref[...],
                      preferred_element_type=jnp.float32)
              + jnp.dot(h2.astype(cdt), wo2_ref[...],
                        preferred_element_type=jnp.float32)
              + bo_ref[...])
    out_ref[...] = logits.astype(out_ref.dtype)


def prepare_params(params, *, compute_dtype=jnp.bfloat16, lane=128):
    """One-time parameter prep, hoisted out of the per-forward hot path.

    params (Linear weights stored [in, out], i.e. transposed nn.Linear):
      w1[D1,H], b1[1,H], w2[D2,H], b2[1,H], wo1[H,O], wo2[H,O], bo[1,O]
      where wo1/wo2 are the h1 / h2 halves of self.out's [2H, O] weight.

    Zero-pads H up to a lane-dense multiple of 128 (exact: pads contribute 0)
    and casts the MXU operands to compute_dtype.  Biases stay f32.
    """
    H = params["w1"].shape[1]
    Hp = _round_up(H, lane)
    ph = Hp - H
    f32 = jnp.float32
    return {
        "w1":  jnp.pad(params["w1"].astype(f32), ((0, 0), (0, ph))).astype(compute_dtype),
        "w2":  jnp.pad(params["w2"].astype(f32), ((0, 0), (0, ph))).astype(compute_dtype),
        "b1":  jnp.pad(params["b1"].astype(f32), ((0, 0), (0, ph))),
        "b2":  jnp.pad(params["b2"].astype(f32), ((0, 0), (0, ph))),
        "wo1": jnp.pad(params["wo1"].astype(f32), ((0, ph), (0, 0))).astype(compute_dtype),
        "wo2": jnp.pad(params["wo2"].astype(f32), ((0, ph), (0, 0))).astype(compute_dtype),
        "bo":  params["bo"].astype(f32),
    }


def _x_spec(block_shape, index_map, deep):
    """Streamed activation tiles: triple-buffer when the grid is deep."""
    if deep:
        try:
            return pl.BlockSpec(block_shape, index_map,
                                pipeline_mode=pl.Buffered(3))
        except (TypeError, AttributeError):
            pass  # pipeline_mode/Buffered unavailable: fall back to default.
    return pl.BlockSpec(block_shape, index_map)


def multipred_forward(x1, x2, prep, *, tb=1024):
    """Fused forward of MultiPredModel.

    x1: [B, D1], x2: [B, D2]  (f32 or bf16 activations; f32 is cast in-kernel)
    prep: output of prepare_params()
    returns logits [B, O] (float32)
    """
    B, D1 = x1.shape
    B2, D2 = x2.shape
    assert B == B2, "x1/x2 batch mismatch"
    Hp = prep["w1"].shape[1]
    O = prep["wo1"].shape[1]

    # ---- batch tiling: round to the activation sublane packing, zero-pad B,
    # and cap the tile so the grid has >= 2 steps (v7x: both TCs get work). --
    sub = 16 if (x1.dtype == jnp.bfloat16 or x2.dtype == jnp.bfloat16) else 8
    B_pad = _round_up(B, sub)
    tb = _round_up(min(tb, B_pad), sub)
    if B_pad // tb < 2 and B_pad >= 2 * sub:
        tb = _round_up(pl.cdiv(B_pad, 2), sub)
    B_pad = _round_up(B_pad, tb)
    if B_pad != B:
        x1 = jnp.pad(x1, ((0, B_pad - B), (0, 0)))
        x2 = jnp.pad(x2, ((0, B_pad - B), (0, 0)))
    steps = B_pad // tb
    deep = steps >= 3

    # Honest scheduler hint (no block-diagonal zero half).
    flops = 2 * B_pad * (D1 + D2) * Hp + 2 * B_pad * (2 * Hp) * O
    bytes_accessed = (
        int(x1.size) * x1.dtype.itemsize + int(x2.size) * x2.dtype.itemsize
        + sum(int(v.size) * v.dtype.itemsize for v in prep.values())
        + B_pad * O * 4)

    out = pl.pallas_call(
        _multipred_kernel,
        out_shape=jax.ShapeDtypeStruct((B_pad, O), jnp.float32),
        grid_spec=pltpu.PrefetchScalarGridSpec(
            num_scalar_prefetch=0,
            grid=(steps,),
            in_specs=[
                _x_spec((tb, D1), lambda i: (i, 0), deep),     # x1 tile
                _x_spec((tb, D2), lambda i: (i, 0), deep),     # x2 tile
                pl.BlockSpec((D1, Hp), lambda i: (0, 0)),      # w1 (padded H)
                pl.BlockSpec((1, Hp), lambda i: (0, 0)),       # b1
                pl.BlockSpec((D2, Hp), lambda i: (0, 0)),      # w2
                pl.BlockSpec((1, Hp), lambda i: (0, 0)),       # b2
                pl.BlockSpec((Hp, O), lambda i: (0, 0)),       # head W, h1 half
                pl.BlockSpec((Hp, O), lambda i: (0, 0)),       # head W, h2 half
                pl.BlockSpec((1, O), lambda i: (0, 0)),        # head bias
            ],
            # True-width O output (block == full last dim): no 8x padded
            # writeback and no trailing [:, :O] slice pass.
            out_specs=pl.BlockSpec((tb, O), lambda i: (i, 0)),
        ),
        compiler_params=pltpu.CompilerParams(
            dimension_semantics=("parallel",)),
        # NOTE: per-step VMEM here is tiny (< a few MiB even at tb=2048), well
        # under every generation's scoped limit incl. v7x's 64 MiB physical.
        # Set vmem_limit_bytes explicitly if H / D / tb grow substantially.
        cost_estimate=pl.CostEstimate(
            flops=flops, transcendentals=0, bytes_accessed=bytes_accessed),
    )(x1, x2, prep["w1"], prep["b1"], prep["w2"], prep["b2"],
      prep["wo1"], prep["wo2"], prep["bo"])

    return out if B_pad == B else out[:B]


def _reference(x1, x2, p):
    h1 = jnp.maximum(x1 @ p["w1"] + p["b1"], 0.0)
    h2 = jnp.maximum(x2 @ p["w2"] + p["b2"], 0.0)
    wout = jnp.concatenate([p["wo1"], p["wo2"]], axis=0)       # [2H, O]
    return jnp.concatenate([h1, h2], axis=1) @ wout + p["bo"]


if __name__ == "__main__":
    # Small shapes consistent with the module:
    #   sub-model input dims D1=32 / D2=48, model_output_size H=32,
    #   output_size O=16, batch=8.
    B, D1, D2, H, O = 8, 32, 48, 32, 16

    key = jax.random.PRNGKey(0)
    k = jax.random.split(key, 9)
    x1 = jax.random.normal(k[0], (B, D1), jnp.float32)
    x2 = jax.random.normal(k[1], (B, D2), jnp.float32)

    params = {
        "w1":  0.1 * jax.random.normal(k[2], (D1, H), jnp.float32),
        "b1":  0.1 * jax.random.normal(k[3], (1, H), jnp.float32),
        "w2":  0.1 * jax.random.normal(k[4], (D2, H), jnp.float32),
        "b2":  0.1 * jax.random.normal(k[5], (1, H), jnp.float32),
        # self.out = Linear(2H, O): its [2H, O] (transposed) weight split
        # into the h1 half (wo1) and the h2 half (wo2).
        "wo1": 0.1 * jax.random.normal(k[6], (H, O), jnp.float32),
        "wo2": 0.1 * jax.random.normal(k[7], (H, O), jnp.float32),
        "bo":  0.1 * jax.random.normal(k[8], (1, O), jnp.float32),
    }

    ref = _reference(x1, x2, params)

    # 1) f32 MXU path — exact same contraction as the reference (tight tol).
    prep_f32 = prepare_params(params, compute_dtype=jnp.float32)
    out_f32 = multipred_forward(x1, x2, prep_f32)
    jax.block_until_ready(out_f32)
    assert out_f32.shape == (B, O)
    assert jnp.allclose(out_f32, ref, atol=1e-5, rtol=1e-5)

    # 2) Default bf16 MXU path with bf16 activations cast upstream (loose tol).
    prep_bf16 = prepare_params(params)          # compute_dtype=bf16 (default)
    out_bf16 = multipred_forward(x1.astype(jnp.bfloat16),
                                 x2.astype(jnp.bfloat16), prep_bf16)
    jax.block_until_ready(out_bf16)
    assert out_bf16.shape == (B, O)
    assert jnp.allclose(out_bf16, ref, atol=3e-2, rtol=3e-2)

    # 3) Larger, non-divisible batch: exercises batch padding, a multi-step
    #    grid (v7x 2-TC sharding) and the Buffered(3) x pipeline.  f32 weights
    #    keep the check tight.
    Bb = 1500
    kb = jax.random.split(jax.random.PRNGKey(1), 2)
    x1b = jax.random.normal(kb[0], (Bb, D1), jnp.float32)
    x2b = jax.random.normal(kb[1], (Bb, D2), jnp.float32)
    out_big = multipred_forward(x1b, x2b, prep_f32, tb=256)
    jax.block_until_ready(out_big)
    assert out_big.shape == (Bb, O)
    assert jnp.allclose(out_big, _reference(x1b, x2b, params),
                        atol=1e-4, rtol=1e-4)

    print("KERNEL_OK")
</pallas_src>

<mosaic_0001>
module attributes {stable_mosaic.version = 11 : i64} {
  func.func @_multipred_kernel(%arg0: i32, %arg1: memref<8x32xf32, #tpu.memory_space<vmem>>, %arg2: memref<8x48xf32, #tpu.memory_space<vmem>>, %arg3: memref<32x128xf32, #tpu.memory_space<vmem>>, %arg4: memref<1x128xf32, #tpu.memory_space<vmem>>, %arg5: memref<48x128xf32, #tpu.memory_space<vmem>>, %arg6: memref<1x128xf32, #tpu.memory_space<vmem>>, %arg7: memref<128x16xf32, #tpu.memory_space<vmem>>, %arg8: memref<128x16xf32, #tpu.memory_space<vmem>>, %arg9: memref<1x16xf32, #tpu.memory_space<vmem>>, %arg10: memref<8x16xf32, #tpu.memory_space<vmem>>) attributes {dimension_semantics = [#tpu.dimension_semantics<parallel>], iteration_bounds = array<i64: 1>, scalar_prefetch = 0 : i64, scratch_operands = 0 : i64, tpu.core_type = #tpu.core_type<tc>, window_params = [{transform_indices = @transform_0, window_bounds = array<i64: 8, 32>}, {transform_indices = @transform_1, window_bounds = array<i64: 8, 48>}, {pipeline_mode = #tpu.pipeline_mode<synchronous>, transform_indices = @transform_2, window_bounds = array<i64: 32, 128>}, {pipeline_mode = #tpu.pipeline_mode<synchronous>, transform_indices = @transform_3, window_bounds = array<i64: 1, 128>}, {pipeline_mode = #tpu.pipeline_mode<synchronous>, transform_indices = @transform_4, window_bounds = array<i64: 48, 128>}, {pipeline_mode = #tpu.pipeline_mode<synchronous>, transform_indices = @transform_5, window_bounds = array<i64: 1, 128>}, {pipeline_mode = #tpu.pipeline_mode<synchronous>, transform_indices = @transform_6, window_bounds = array<i64: 128, 16>}, {pipeline_mode = #tpu.pipeline_mode<synchronous>, transform_indices = @transform_7, window_bounds = array<i64: 128, 16>}, {pipeline_mode = #tpu.pipeline_mode<synchronous>, transform_indices = @transform_8, window_bounds = array<i64: 1, 16>}, {transform_indices = @transform_9, window_bounds = array<i64: 8, 16>}]} {
    %c0 = arith.constant 0 : index
    %c0_0 = arith.constant 0 : index
    %0 = vector.load %arg1[%c0, %c0_0] : memref<8x32xf32, #tpu.memory_space<vmem>>, vector<8x32xf32>
    %c0_1 = arith.constant 0 : index
    %c0_2 = arith.constant 0 : index
    %1 = vector.load %arg3[%c0_1, %c0_2] : memref<32x128xf32, #tpu.memory_space<vmem>>, vector<32x128xf32>
    %cst = arith.constant dense<0.000000e+00> : vector<8x128xf32>
    %2 = tpu.matmul %0, %1, %cst {dimension_numbers = #tpu.dot_dimension_numbers<[1], [0], [0], [1], [0, 0, 1, 1], [], []>} : vector<8x32xf32>, vector<32x128xf32>, vector<8x128xf32> -> vector<8x128xf32>
    %c0_3 = arith.constant 0 : index
    %c0_4 = arith.constant 0 : index
    %3 = vector.load %arg4[%c0_3, %c0_4] : memref<1x128xf32, #tpu.memory_space<vmem>>, vector<1x128xf32>
    %4 = vector.broadcast %3 : vector<1x128xf32> to vector<8x128xf32>
    %5 = arith.addf %2, %4 : vector<8x128xf32>
    %cst_5 = arith.constant 0.000000e+00 : f32
    %6 = vector.broadcast %cst_5 : f32 to vector<8x128xf32>
    %7 = arith.maximumf %5, %6 : vector<8x128xf32>
    %c0_6 = arith.constant 0 : index
    %c0_7 = arith.constant 0 : index
    %8 = vector.load %arg2[%c0_6, %c0_7] : memref<8x48xf32, #tpu.memory_space<vmem>>, vector<8x48xf32>
    %c0_8 = arith.constant 0 : index
    %c0_9 = arith.constant 0 : index
    %9 = vector.load %arg5[%c0_8, %c0_9] : memref<48x128xf32, #tpu.memory_space<vmem>>, vector<48x128xf32>
    %cst_10 = arith.constant dense<0.000000e+00> : vector<8x128xf32>
    %10 = tpu.matmul %8, %9, %cst_10 {dimension_numbers = #tpu.dot_dimension_numbers<[1], [0], [0], [1], [0, 0, 1, 1], [], []>} : vector<8x48xf32>, vector<48x128xf32>, vector<8x128xf32> -> vector<8x128xf32>
    %c0_11 = arith.constant 0 : index
    %c0_12 = arith.constant 0 : index
    %11 = vector.load %arg6[%c0_11, %c0_12] : memref<1x128xf32, #tpu.memory_space<vmem>>, vector<1x128xf32>
    %12 = vector.broadcast %11 : vector<1x128xf32> to vector<8x128xf32>
    %13 = arith.addf %10, %12 : vector<8x128xf32>
    %cst_13 = arith.constant 0.000000e+00 : f32
    %14 = vector.broadcast %cst_13 : f32 to vector<8x128xf32>
    %15 = arith.maximumf %13, %14 : vector<8x128xf32>
    %c0_14 = arith.constant 0 : index
    %c0_15 = arith.constant 0 : index
    %16 = vector.load %arg7[%c0_14, %c0_15] : memref<128x16xf32, #tpu.memory_space<vmem>>, vector<128x16xf32>
    %cst_16 = arith.constant dense<0.000000e+00> : vector<8x16xf32>
    %17 = tpu.matmul %7, %16, %cst_16 {dimension_numbers = #tpu.dot_dimension_numbers<[1], [0], [0], [1], [0, 0, 1, 1], [], []>} : vector<8x128xf32>, vector<128x16xf32>, vector<8x16xf32> -> vector<8x16xf32>
    %c0_17 = arith.constant 0 : index
    %c0_18 = arith.constant 0 : index
    %18 = vector.load %arg8[%c0_17, %c0_18] : memref<128x16xf32, #tpu.memory_space<vmem>>, vector<128x16xf32>
    %cst_19 = arith.constant dense<0.000000e+00> : vector<8x16xf32>
    %19 = tpu.matmul %15, %18, %cst_19 {dimension_numbers = #tpu.dot_dimension_numbers<[1], [0], [0], [1], [0, 0, 1, 1], [], []>} : vector<8x128xf32>, vector<128x16xf32>, vector<8x16xf32> -> vector<8x16xf32>
    %20 = arith.addf %17, %19 : vector<8x16xf32>
    %c0_20 = arith.constant 0 : index
    %c0_21 = arith.constant 0 : index
    %21 = vector.load %arg9[%c0_20, %c0_21] : memref<1x16xf32, #tpu.memory_space<vmem>>, vector<1x16xf32>
    %22 = vector.broadcast %21 : vector<1x16xf32> to vector<8x16xf32>
    %23 = arith.addf %20, %22 : vector<8x16xf32>
    %c0_22 = arith.constant 0 : index
    %c0_23 = arith.constant 0 : index
    %24 = vector.load %arg10[%c0_22, %c0_23] : memref<8x16xf32, #tpu.memory_space<vmem>>, vector<8x16xf32>
    tpu.vector_store %arg10[%c0_22, %c0_23], %23 {strides = array<i32>} : memref<8x16xf32, #tpu.memory_space<vmem>>, vector<8x16xf32>,
    return
  }
  func.func @transform_0(%arg0: i32) -> (i32, i32) {
    %c0_i32 = arith.constant 0 : i32
    %c0_i32_0 = arith.constant 0 : i32
    return %arg0, %c0_i32 : i32, i32
  }
  func.func @transform_1(%arg0: i32) -> (i32, i32) {
    %c0_i32 = arith.constant 0 : i32
    %c0_i32_0 = arith.constant 0 : i32
    return %arg0, %c0_i32 : i32, i32
  }
  func.func @transform_2(%arg0: i32) -> (i32, i32) {
    %c0_i32 = arith.constant 0 : i32
    %c0_i32_0 = arith.constant 0 : i32
    %c0_i32_1 = arith.constant 0 : i32
    return %c0_i32, %c0_i32_0 : i32, i32
  }
  func.func @transform_3(%arg0: i32) -> (i32, i32) {
    %c0_i32 = arith.constant 0 : i32
    %c0_i32_0 = arith.constant 0 : i32
    %c0_i32_1 = arith.constant 0 : i32
    return %c0_i32, %c0_i32_0 : i32, i32
  }
  func.func @transform_4(%arg0: i32) -> (i32, i32) {
    %c0_i32 = arith.constant 0 : i32
    %c0_i32_0 = arith.constant 0 : i32
    %c0_i32_1 = arith.constant 0 : i32
    return %c0_i32, %c0_i32_0 : i32, i32
  }
  func.func @transform_5(%arg0: i32) -> (i32, i32) {
    %c0_i32 = arith.constant 0 : i32
    %c0_i32_0 = arith.constant 0 : i32
    %c0_i32_1 = arith.constant 0 : i32
    return %c0_i32, %c0_i32_0 : i32, i32
  }
  func.func @transform_6(%arg0: i32) -> (i32, i32) {
    %c0_i32 = arith.constant 0 : i32
    %c0_i32_0 = arith.constant 0 : i32
    %c0_i32_1 = arith.constant 0 : i32
    return %c0_i32, %c0_i32_0 : i32, i32
  }
  func.func @transform_7(%arg0: i32) -> (i32, i32) {
    %c0_i32 = arith.constant 0 : i32
    %c0_i32_0 = arith.constant 0 : i32
    %c0_i32_1 = arith.constant 0 : i32
    return %c0_i32, %c0_i32_0 : i32, i32
  }
  func.func @transform_8(%arg0: i32) -> (i32, i32) {
    %c0_i32 = arith.constant 0 : i32
    %c0_i32_0 = arith.constant 0 : i32
    %c0_i32_1 = arith.constant 0 : i32
    return %c0_i32, %c0_i32_0 : i32, i32
  }
  func.func @transform_9(%arg0: i32) -> (i32, i32) {
    %c0_i32 = arith.constant 0 : i32
    %c0_i32_0 = arith.constant 0 : i32
    return %arg0, %c0_i32 : i32, i32
  }
}

</mosaic_0001>

<bundles_post_ra>
// kernel: tpu_custom_call.1
= control target key start
LH: loop header
LB: loop body
LE: loop exit
PB: predicated region body
PF: predicated region fallthrough
CT: control target
= control target key end

     0   :  { %vm42_vm0 = vcmask 261120   ;;  %vm78_vm1 = vcmask 392192   ;;  %s425_s0 = inlined_call_operand.vmem [shape: f32[8,32], index: 0, kind: input, shape index: {}]   ;;  %s426_s1 = inlined_call_operand.vmem [shape: f32[8,48], index: 1, kind: input, shape index: {}]   ;;  %s427_s2 = inlined_call_operand.vmem [shape: f32[32,128], index: 2, kind: input, shape index: {}]   ;;  %s428_s3 = inlined_call_operand.vmem [shape: f32[1,128], index: 3, kind: input, shape index: {}]   ;;  %s429_s4 = inlined_call_operand.vmem [shape: f32[48,128], index: 4, kind: input, shape index: {}]   ;;  %s430_s5 = inlined_call_operand.vmem [shape: f32[1,128], index: 5, kind: input, shape index: {}]   ;;  %s431_s6 = inlined_call_operand.vmem [shape: f32[128,16], index: 6, kind: input, shape index: {}]   ;;  %s432_s7 = inlined_call_operand.vmem [shape: f32[128,16], index: 7, kind: input, shape index: {}]   ;;  %s433_s8 = inlined_call_operand.vmem [shape: f32[1,16], index: 8, kind: input, shape index: {}]   ;;  %s434_s9 = inlined_call_operand.hbm [shape: f32[8,16], index: 9, kind: output, shape index: {}]  }
   0x1   :  { %v73_v0 = vld [vmem:[%s429_s4 + $0x28] sm:$0xff]  ;;  %v72_v1 = vld [vmem:[%s429_s4 + $0x20] sm:$0xff]  ;;  %v37_v2 = vld [vmem:[%s427_s2 + $0x18] sm:$0xff] }
   0x2   :  { %92 = vmatpush.msra.mxu1 %v73_v0  ;;  %58 = vmatpush.msra.mxu0 %v37_v2  ;;  %v36_v3 = vld [vmem:[%s427_s2 + $0x10] sm:$0xff]  ;;  %v71_v4 = vld [vmem:[%s429_s4 + $0x18] sm:$0xff]  ;;  %v35_v5 = vld [vmem:[%s427_s2 + $0x8] sm:$0xff] }
   0x3   :  { %v70_v6 = vld [vmem:[%s429_s4 + $0x10] sm:$0xff]  ;;  %v34_v7 = vld [vmem:[%s427_s2] sm:$0xff]  ;;  %v134_v8 = vld [vmem:[%s432_s7 + $0x78] sm:$0xff] }
   0x4   :  { %93 = vmatpush.msra.mxu1 %v72_v1  ;;  %59 = vmatpush.msra.mxu0 %v36_v3  ;;  %v118_v9 = vld [vmem:[%s431_s6 + $0x78] sm:$0xff]  ;;  %v33_v10 = vld [vmem:[%s425_s0] sm:$0xff]  ;;  %v133_v11 = vld [vmem:[%s432_s7 + $0x70] sm:$0xff] }
   0x5   :  { %v69_v12 = vld [vmem:[%s429_s4 + $0x8] sm:$0xff]  ;;  %135 = vmatpush.msra.mxu2 %v134_v8  ;;  %155 = vmatpush.msra.mxu3 %v118_v9  ;;  %v117_v13 = vld [vmem:[%s431_s6 + $0x70] sm:$0xff]  ;;  %v68_v15 = vld [vmem:[%s429_s4] sm:$0xff] }
   0x6   :  { %94 = vmatpush.msra.mxu1 %v71_v4  ;;  %60 = vmatpush.msra.mxu0 %v35_v5  ;;  %v132_v14 = vld [vmem:[%s432_s7 + $0x68] sm:$0xff]  ;;  %v67_v17 = vld [vmem:[%s426_s1] sm:$0xff]  ;;  %v130_v20 = vld [vmem:[%s432_s7 + $0x58] sm:$0xff] }
   0x7   :  { %136 = vmatpush.msra.mxu2 %v133_v11  ;;  %v116_v16 = vld [vmem:[%s431_s6 + $0x68] sm:$0xff]  ;;  %156 = vmatpush.msra.mxu3 %v117_v13  ;;  %v131_v18 = vld [vmem:[%s432_s7 + $0x60] sm:$0xff]  ;;  %v114_v21 = vld [vmem:[%s431_s6 + $0x58] sm:$0xff] }
   0x8   :  { %95 = vmatpush.msra.mxu1 %v70_v6  ;;  %61 = vmatpush.msra.mxu0 %v34_v7  ;;  %v115_v19 = vld [vmem:[%s431_s6 + $0x60] sm:$0xff]  ;;  %v129_v22 = vld [vmem:[%s432_s7 + $0x50] sm:$0xff] }
   0x9   :  { %198 = vmatmul.msk.f32.vlgmr.msra.gmra.mxu0 %vm42_vm0, %v33_v10  ;;  %137 = vmatpush.msra.mxu2 %v132_v14  ;;  %v113_v23 = vld [vmem:[%s431_s6 + $0x50] sm:$0xff] }
   0xa   :  { %96 = vmatpush.msra.mxu1 %v69_v12  ;;  %157 = vmatpush.msra.mxu3 %v116_v16 }
   0xb   :  { %138 = vmatpush.msra.mxu2 %v131_v18 }
   0xc   :  { %97 = vmatpush.msra.mxu1 %v68_v15  ;;  %158 = vmatpush.msra.mxu3 %v115_v19 }
   0xd   :  { %199 = vmatmul.msk.f32.vlgmr.msra.gmra.mxu1 %vm78_vm1, %v67_v17  ;;  %139 = vmatpush.msra.mxu2 %v130_v20 }
   0xe   :  { %14 = vsyncpa [#allocation3], 0  ;;  %159 = vmatpush.msra.mxu3 %v114_v21  ;;  %v128_v24 = vld [vmem:[%s432_s7 + $0x48] sm:$0xff]  ;;  %v127_v26 = vld [vmem:[%s432_s7 + $0x40] sm:$0xff]  ;;  %s230_s1 = smov [#allocation2]   ;;  %s189_s29 = sshll.u32 %s434_s9, 4  ;;  %s190_s29 = int_to_ptr.hbm [resolvable:$true] %s189_s29 }
   0xf   :  { %140 = vmatpush.msra.mxu2 %v129_v22  ;;  %v112_v25 = vld [vmem:[%s431_s6 + $0x48] sm:$0xff]  ;;  %v111_v27 = vld [vmem:[%s431_s6 + $0x40] sm:$0xff]  ;;  %v126_v28 = vld [vmem:[%s432_s7 + $0x38] sm:$0xff]  ;;  %vm180_vm2 = vcmask 130048  }
  0x10   :  { %160 = vmatpush.msra.mxu3 %v113_v23  ;;  %v110_v29 = vld [vmem:[%s431_s6 + $0x38] sm:$0xff]  ;;  %v125_v30 = vld [vmem:[%s432_s7 + $0x30] sm:$0xff]  ;;  %v124_v32 = vld [vmem:[%s432_s7 + $0x28] sm:$0xff] }
  0x11   :  { %141 = vmatpush.msra.mxu2 %v128_v24  ;;  %v109_v31 = vld [vmem:[%s431_s6 + $0x30] sm:$0xff]  ;;  %v108_v33 = vld [vmem:[%s431_s6 + $0x28] sm:$0xff]  ;;  %v123_v34 = vld [vmem:[%s432_s7 + $0x20] sm:$0xff] }
  0x12   :  { %161 = vmatpush.msra.mxu3 %v112_v25  ;;  %v107_v35 = vld [vmem:[%s431_s6 + $0x20] sm:$0xff]  ;;  %v122_v36 = vld [vmem:[%s432_s7 + $0x18] sm:$0xff]  ;;  %v121_v38 = vld [vmem:[%s432_s7 + $0x10] sm:$0xff] }
  0x13   :  { %142 = vmatpush.msra.mxu2 %v127_v26  ;;  %v106_v37 = vld [vmem:[%s431_s6 + $0x18] sm:$0xff]  ;;  %v105_v39 = vld [vmem:[%s431_s6 + $0x10] sm:$0xff]  ;;  %v120_v40 = vld [vmem:[%s432_s7 + $0x8] sm:$0xff] }
  0x14   :  { %162 = vmatpush.msra.mxu3 %v111_v27  ;;  %v104_v41 = vld [vmem:[%s431_s6 + $0x8] sm:$0xff]  ;;  %v119_v42 = vld [vmem:[%s432_s7] sm:$0xff] }
  0x15   :  { %143 = vmatpush.msra.mxu2 %v126_v28  ;;  %v103_v43 = vld [vmem:[%s431_s6] sm:$0xff] }
  0x16   :  { %163 = vmatpush.msra.mxu3 %v110_v29  ;;  %v201_v44 = vld [vmem:[%s428_s3] ss:$0 sm:$0xff]  ;;  %s187_s3 = sshll.u32 %s230_s1, 4  ;;  %s188_s3 = int_to_ptr.vmem [resolvable:$true] %s187_s3 }
  0x17   :  { %144 = vmatpush.msra.mxu2 %v125_v30  ;;  %v202_v47 = vld [vmem:[%s430_s5] ss:$0 sm:$0xff] }
  0x18   :  { %164 = vmatpush.msra.mxu3 %v109_v31  ;;  %v203_v53 = vld [vmem:[%s433_s8] ss:$0 sm:$0xff] }
  0x19   :  { %145 = vmatpush.msra.mxu2 %v124_v32 }
  0x1a   :  { %165 = vmatpush.msra.mxu3 %v108_v33 }
  0x1b   :  { %146 = vmatpush.msra.mxu2 %v123_v34 }
  0x1c   :  { %166 = vmatpush.msra.mxu3 %v107_v35 }
  0x1d   :  { %147 = vmatpush.msra.mxu2 %v122_v36 }
  0x1e   :  { %167 = vmatpush.msra.mxu3 %v106_v37 }
  0x1f   :  { %148 = vmatpush.msra.mxu2 %v121_v38 }
  0x20   :  { %168 = vmatpush.msra.mxu3 %v105_v39 }
  0x21   :  { %149 = vmatpush.msra.mxu2 %v120_v40 }
  0x22   :  { %169 = vmatpush.msra.mxu3 %v104_v41 }
  0x23   :  { %150 = vmatpush.msra.mxu2 %v119_v42 }
  0x24   :  { %170 = vmatpush.msra.mxu3 %v103_v43 }
  0x86   :  { %v63_v45 = vpop.f32.mrf.mxu0 }
  0x87   :  { %v64_v46 = vadd.f32 %v201_v44, %v63_v45 }
  0x89   :  { %v66_v48 = vmax.f32 %v64_v46, 0.0 }
  0x8a   :  { %v99_v49 = vpop.f32.mrf.mxu1 }
  0x8b   :  { %v100_v50 = vadd.f32 %v202_v47, %v99_v49  ;;  %171 = vmatmul.f32.vlgmr.msra.gmra.mxu3 %v66_v48 }
  0x8d   :  { %v102_v51 = vmax.f32 %v100_v50, 0.0 }
  0x8f   :  { %151 = vmatmul.f32.vlgmr.msra.gmra.mxu2 %v102_v51 }
 0x10e   :  { %v172_v52 = vpop.f32.mrf.mxu3 }
 0x112   :  { %v152_v54 = vpop.f32.mrf.mxu2 }
 0x113   :  { %v173_v55 = vadd.f32 %v172_v52, %v152_v54 }
 0x115   :  { %v179_v56 = vadd.f32 %v203_v53, %v173_v55 }
 0x117   :  { %181 = vst.msk [vmem:[#allocation2] sm:$0xff] %vm180_vm2, %v179_v56 }
 0x118   :  { %192 = dma.vmem_to_hbm [thread:$0]  %s188_s3, 128, %s190_s29, [#allocation3]  }
 0x119   :  { %228 = dma.done.wait [#allocation3], 128  }
 0x11a   :  { %229 = vsyncadd [#allocation3], 4294967168 }
 0x11b   :  { %197 = vsyncpa [#allocation3], 1 }

</bundles_post_ra>
